<compile_context>
chip_gen: v7x
topology: tpu7x:2x2x1
jax: 0.10.0
libtpu: 0.0.40
codegen_flags: <defaults>
</compile_context>

<pallas_src>
import jax
import jax.numpy as jnp
from jax.experimental import pallas as pl
from jax.experimental.pallas import tpu as pltpu


def _round_up(x, m):
    return (x + m - 1) // m * m


def _mlp_kernel(x0_ref, x1_ref, w1aT_ref, w1bT_ref, b1T_ref,
                w2T_ref, b2T_ref, w3T_ref, b3_ref, o_ref):
    # Shapes per grid step (batch-on-lanes layout):
    #   x0_ref : (tb, D)         x1_ref : (1, 1, tb)
    #   w1aT   : (50, D)  w1bT : (50, 1)  b1T : (50, 1)
    #   w2T    : (30, 50) b2T  : (30, 1)
    #   w3T    : (1, 30)  b3   : (1, 1)
    #   o_ref  : (1, 1, tb)
    x0 = x0_ref[...].astype(jnp.float32)      # (tb, D)  (upcast if bf16 input)
    x1 = x1_ref[...][0].astype(jnp.float32)   # (1, tb)

    # Layer 1: h1ᵀ = sigmoid(w1aᵀ @ x0ᵀ + w1bᵀ * x1ᵀ + b1ᵀ)  -> (50, tb).
    # The torch.cat column is fused as a broadcast multiply-add (no K=1 MXU op).
    h1 = jax.lax.dot_general(
        w1aT_ref[...], x0,
        dimension_numbers=(((1,), (1,)), ((), ())),   # contract over D
        preferred_element_type=jnp.float32,
    )
    h1 = jax.nn.sigmoid(h1 + w1bT_ref[...] * x1 + b1T_ref[...])

    # Layer 2: (30,50) @ (50,tb) -> (30,tb), lane-dense activations.
    h2 = jax.nn.sigmoid(
        jnp.dot(w2T_ref[...], h1, preferred_element_type=jnp.float32)
        + b2T_ref[...]
    )

    # Layer 3: (1,30) @ (30,tb) -> (1,tb), lane-dense output row.
    o = jax.nn.sigmoid(
        jnp.dot(w3T_ref[...], h2, preferred_element_type=jnp.float32)
        + b3_ref[...]
    )
    o_ref[...] = o[None]                       # (1, 1, tb)


def prediction_model_forward(x_prs, params, *, batch_tile=1024):
    """x_prs = (x0 [B, input_dim], x1 [B, 1]); returns [B, 1] float32."""
    w1, b1, w2, b2, w3, b3 = params
    x0, x1 = x_prs
    B, D = x0.shape
    assert x1.shape == (B, 1)

    # Fuse the concat: split w1 into the x0 block and the x1 column; pre-
    # transpose the tiny weights so the kernel runs batch-on-lanes.
    w1f = w1.astype(jnp.float32)
    w1aT = w1f[:D].T                                   # (50, D)
    w1bT = w1f[D:].T                                   # (50, 1)
    b1T = b1.reshape(1, -1).astype(jnp.float32).T      # (50, 1)
    w2T = w2.astype(jnp.float32).T                     # (30, 50)
    b2T = b2.reshape(1, -1).astype(jnp.float32).T      # (30, 1)
    w3T = w3.astype(jnp.float32).T                     # (1, 30)
    b3r = b3.reshape(1, 1).astype(jnp.float32)         # (1, 1)

    # Batch tile: big enough to amortize per-step overhead, capped so the
    # double-buffered x0 tile stays a few MiB under VMEM limits (v7x: 64 MiB).
    tb = min(int(batch_tile), _round_up(B, 8))
    vmem_cap = max(8, ((8 * 1024 * 1024) // max(4 * D, 1)) // 8 * 8)
    tb = max(8, min(_round_up(tb, 8), vmem_cap))
    Bp = _round_up(B, tb)
    grid_n = Bp // tb

    if Bp != B:
        pad = Bp - B
        x0 = jnp.pad(x0, ((0, pad), (0, 0)))
        x1 = jnp.pad(x1, ((0, pad), (0, 0)))

    # x1 is tiny: view it batch-on-lanes so the kernel reads it as (1, tb) rows.
    x1r = x1.reshape(grid_n, 1, tb)

    def full2d(a):
        return pl.BlockSpec(a.shape, lambda i: (0, 0))

    out3 = pl.pallas_call(
        _mlp_kernel,
        out_shape=jax.ShapeDtypeStruct((grid_n, 1, tb), jnp.float32),
        grid_spec=pltpu.PrefetchScalarGridSpec(
            num_scalar_prefetch=0,
            grid=(grid_n,),
            in_specs=[
                pl.BlockSpec((tb, D), lambda i: (i, 0)),        # x0 tile
                pl.BlockSpec((1, 1, tb), lambda i: (i, 0, 0)),  # x1 tile (lanes)
                full2d(w1aT), full2d(w1bT), full2d(b1T),
                full2d(w2T), full2d(b2T),
                full2d(w3T), full2d(b3r),
            ],
            out_specs=pl.BlockSpec((1, 1, tb), lambda i: (i, 0, 0)),
        ),
        compiler_params=pltpu.CompilerParams(
            dimension_semantics=("parallel",),
        ),
    )(x0, x1r, w1aT, w1bT, b1T, w2T, b2T, w3T, b3r)

    return out3.reshape(Bp, 1)[:B]


def init_params(input_dim, key):
    """nn.Linear-style init; weights stored (fan_in, fan_out), bias (1, fan_out)."""
    d1 = input_dim + 1
    dims = [(d1, 50), (50, 30), (30, 1)]
    params = []
    for fan_in, fan_out in dims:
        key, kw, kb = jax.random.split(key, 3)
        bound = 1.0 / jnp.sqrt(fan_in)
        w = jax.random.uniform(kw, (fan_in, fan_out), jnp.float32, -bound, bound)
        b = jax.random.uniform(kb, (1, fan_out), jnp.float32, -bound, bound)
        params += [w, b]
    return tuple(params)


def _reference_forward(x_prs, params):
    w1, b1, w2, b2, w3, b3 = params
    x = jnp.concatenate([x_prs[0], x_prs[1]], axis=1)
    h1 = jax.nn.sigmoid(x @ w1 + b1)
    h2 = jax.nn.sigmoid(h1 @ w2 + b2)
    return jax.nn.sigmoid(h2 @ w3 + b3)


if __name__ == "__main__":
    input_dim = 32
    batch = 16

    key = jax.random.PRNGKey(0)
    key, k0, k1 = jax.random.split(key, 3)
    x0 = jax.random.normal(k0, (batch, input_dim), jnp.float32)
    x1 = jax.random.normal(k1, (batch, 1), jnp.float32)
    params = init_params(input_dim, key)

    # batch_tile=8 -> 2 grid steps at this small demo size (pipelining + both
    # v7x TensorCores get work). Large batches use the 1024 default.
    out = prediction_model_forward((x0, x1), params, batch_tile=8)
    out = jax.block_until_ready(out)
    ref = _reference_forward((x0, x1), params)
    assert out.shape == (batch, 1)
    assert jnp.allclose(out, ref, atol=1e-5, rtol=1e-4)

    # Ragged batch: exercises the tail-padding path (B not a tile multiple).
    out2 = prediction_model_forward((x0[:13], x1[:13]), params, batch_tile=8)
    out2 = jax.block_until_ready(out2)
    assert out2.shape == (13, 1)
    assert jnp.allclose(out2, ref[:13], atol=1e-5, rtol=1e-4)

    print("KERNEL_OK")
</pallas_src>

<mosaic_0001>
module attributes {stable_mosaic.version = 11 : i64} {
  func.func @_mlp_kernel(%arg0: i32, %arg1: memref<8x32xf32, #tpu.memory_space<vmem>>, %arg2: memref<1x1x8xf32, #tpu.memory_space<vmem>>, %arg3: memref<50x32xf32, #tpu.memory_space<vmem>>, %arg4: memref<50x1xf32, #tpu.memory_space<vmem>>, %arg5: memref<50x1xf32, #tpu.memory_space<vmem>>, %arg6: memref<30x50xf32, #tpu.memory_space<vmem>>, %arg7: memref<30x1xf32, #tpu.memory_space<vmem>>, %arg8: memref<1x30xf32, #tpu.memory_space<vmem>>, %arg9: memref<1x1xf32, #tpu.memory_space<vmem>>, %arg10: memref<1x1x8xf32, #tpu.memory_space<vmem>>) attributes {dimension_semantics = [#tpu.dimension_semantics<parallel>], iteration_bounds = array<i64: 2>, scalar_prefetch = 0 : i64, scratch_operands = 0 : i64, tpu.core_type = #tpu.core_type<tc>, window_params = [{transform_indices = @transform_0, window_bounds = array<i64: 8, 32>}, {transform_indices = @transform_1, window_bounds = array<i64: 1, 1, 8>}, {pipeline_mode = #tpu.pipeline_mode<synchronous>, transform_indices = @transform_2, window_bounds = array<i64: 50, 32>}, {pipeline_mode = #tpu.pipeline_mode<synchronous>, transform_indices = @transform_3, window_bounds = array<i64: 50, 1>}, {pipeline_mode = #tpu.pipeline_mode<synchronous>, transform_indices = @transform_4, window_bounds = array<i64: 50, 1>}, {pipeline_mode = #tpu.pipeline_mode<synchronous>, transform_indices = @transform_5, window_bounds = array<i64: 30, 50>}, {pipeline_mode = #tpu.pipeline_mode<synchronous>, transform_indices = @transform_6, window_bounds = array<i64: 30, 1>}, {pipeline_mode = #tpu.pipeline_mode<synchronous>, transform_indices = @transform_7, window_bounds = array<i64: 1, 30>}, {pipeline_mode = #tpu.pipeline_mode<synchronous>, transform_indices = @transform_8, window_bounds = array<i64: 1, 1>}, {transform_indices = @transform_9, window_bounds = array<i64: 1, 1, 8>}]} {
    %c0 = arith.constant 0 : index
    %c0_0 = arith.constant 0 : index
    %0 = vector.load %arg1[%c0, %c0_0] : memref<8x32xf32, #tpu.memory_space<vmem>>, vector<8x32xf32>
    %c0_1 = arith.constant 0 : index
    %c0_2 = arith.constant 0 : index
    %c0_3 = arith.constant 0 : index
    %1 = vector.load %arg2[%c0_1, %c0_2, %c0_3] : memref<1x1x8xf32, #tpu.memory_space<vmem>>, vector<1x1x8xf32>
    %2 = vector.shape_cast %1 : vector<1x1x8xf32> to vector<1x8xf32>
    %c0_4 = arith.constant 0 : index
    %c0_5 = arith.constant 0 : index
    %3 = vector.load %arg3[%c0_4, %c0_5] : memref<50x32xf32, #tpu.memory_space<vmem>>, vector<50x32xf32>
    %cst = arith.constant dense<0.000000e+00> : vector<50x8xf32>
    %4 = tpu.matmul %3, %0, %cst {dimension_numbers = #tpu.dot_dimension_numbers<[1], [1], [0], [0], [0, 0, 1, 0], [], []>} : vector<50x32xf32>, vector<8x32xf32>, vector<50x8xf32> -> vector<50x8xf32>
    %c0_6 = arith.constant 0 : index
    %c0_7 = arith.constant 0 : index
    %5 = vector.load %arg4[%c0_6, %c0_7] : memref<50x1xf32, #tpu.memory_space<vmem>>, vector<50x1xf32>
    %6 = vector.broadcast %5 : vector<50x1xf32> to vector<50x8xf32>
    %7 = vector.broadcast %2 : vector<1x8xf32> to vector<50x8xf32>
    %8 = arith.mulf %6, %7 : vector<50x8xf32>
    %9 = arith.addf %4, %8 : vector<50x8xf32>
    %c0_8 = arith.constant 0 : index
    %c0_9 = arith.constant 0 : index
    %10 = vector.load %arg5[%c0_8, %c0_9] : memref<50x1xf32, #tpu.memory_space<vmem>>, vector<50x1xf32>
    %11 = vector.broadcast %10 : vector<50x1xf32> to vector<50x8xf32>
    %12 = arith.addf %9, %11 : vector<50x8xf32>
    %13 = arith.negf %12 : vector<50x8xf32>
    %14 = math.exp %13 : vector<50x8xf32>
    %cst_10 = arith.constant 1.000000e+00 : f32
    %15 = vector.broadcast %cst_10 : f32 to vector<50x8xf32>
    %16 = arith.addf %15, %14 : vector<50x8xf32>
    %17 = arith.divf %15, %16 : vector<50x8xf32>
    %c0_11 = arith.constant 0 : index
    %c0_12 = arith.constant 0 : index
    %18 = vector.load %arg6[%c0_11, %c0_12] : memref<30x50xf32, #tpu.memory_space<vmem>>, vector<30x50xf32>
    %cst_13 = arith.constant dense<0.000000e+00> : vector<30x8xf32>
    %19 = tpu.matmul %18, %17, %cst_13 {dimension_numbers = #tpu.dot_dimension_numbers<[1], [0], [0], [1], [0, 0, 1, 1], [], []>} : vector<30x50xf32>, vector<50x8xf32>, vector<30x8xf32> -> vector<30x8xf32>
    %c0_14 = arith.constant 0 : index
    %c0_15 = arith.constant 0 : index
    %20 = vector.load %arg7[%c0_14, %c0_15] : memref<30x1xf32, #tpu.memory_space<vmem>>, vector<30x1xf32>
    %21 = vector.broadcast %20 : vector<30x1xf32> to vector<30x8xf32>
    %22 = arith.addf %19, %21 : vector<30x8xf32>
    %23 = arith.negf %22 : vector<30x8xf32>
    %24 = math.exp %23 : vector<30x8xf32>
    %cst_16 = arith.constant 1.000000e+00 : f32
    %25 = vector.broadcast %cst_16 : f32 to vector<30x8xf32>
    %26 = arith.addf %25, %24 : vector<30x8xf32>
    %27 = arith.divf %25, %26 : vector<30x8xf32>
    %c0_17 = arith.constant 0 : index
    %c0_18 = arith.constant 0 : index
    %28 = vector.load %arg8[%c0_17, %c0_18] : memref<1x30xf32, #tpu.memory_space<vmem>>, vector<1x30xf32>
    %cst_19 = arith.constant dense<0.000000e+00> : vector<1x8xf32>
    %29 = tpu.matmul %28, %27, %cst_19 {dimension_numbers = #tpu.dot_dimension_numbers<[1], [0], [0], [1], [0, 0, 1, 1], [], []>} : vector<1x30xf32>, vector<30x8xf32>, vector<1x8xf32> -> vector<1x8xf32>
    %c0_20 = arith.constant 0 : index
    %c0_21 = arith.constant 0 : index
    %30 = vector.load %arg9[%c0_20, %c0_21] : memref<1x1xf32, #tpu.memory_space<vmem>>, vector<1x1xf32>
    %31 = vector.broadcast %30 : vector<1x1xf32> to vector<1x8xf32>
    %32 = arith.addf %29, %31 : vector<1x8xf32>
    %33 = arith.negf %32 : vector<1x8xf32>
    %34 = math.exp %33 : vector<1x8xf32>
    %cst_22 = arith.constant 1.000000e+00 : f32
    %35 = vector.broadcast %cst_22 : f32 to vector<1x8xf32>
    %36 = arith.addf %35, %34 : vector<1x8xf32>
    %37 = arith.divf %35, %36 : vector<1x8xf32>
    %38 = vector.shape_cast %37 : vector<1x8xf32> to vector<1x1x8xf32>
    %c0_23 = arith.constant 0 : index
    %c0_24 = arith.constant 0 : index
    %c0_25 = arith.constant 0 : index
    %39 = vector.load %arg10[%c0_23, %c0_24, %c0_25] : memref<1x1x8xf32, #tpu.memory_space<vmem>>, vector<1x1x8xf32>
    tpu.vector_store %arg10[%c0_23, %c0_24, %c0_25], %38 {strides = array<i32>} : memref<1x1x8xf32, #tpu.memory_space<vmem>>, vector<1x1x8xf32>,
    return
  }
  func.func @transform_0(%arg0: i32) -> (i32, i32) {
    %c0_i32 = arith.constant 0 : i32
    %c0_i32_0 = arith.constant 0 : i32
    return %arg0, %c0_i32 : i32, i32
  }
  func.func @transform_1(%arg0: i32) -> (i32, i32, i32) {
    %c0_i32 = arith.constant 0 : i32
    %c0_i32_0 = arith.constant 0 : i32
    %c0_i32_1 = arith.constant 0 : i32
    return %arg0, %c0_i32, %c0_i32_0 : i32, i32, i32
  }
  func.func @transform_2(%arg0: i32) -> (i32, i32) {
    %c0_i32 = arith.constant 0 : i32
    %c0_i32_0 = arith.constant 0 : i32
    %c0_i32_1 = arith.constant 0 : i32
    return %c0_i32, %c0_i32_0 : i32, i32
  }
  func.func @transform_3(%arg0: i32) -> (i32, i32) {
    %c0_i32 = arith.constant 0 : i32
    %c0_i32_0 = arith.constant 0 : i32
    %c0_i32_1 = arith.constant 0 : i32
    return %c0_i32, %c0_i32_0 : i32, i32
  }
  func.func @transform_4(%arg0: i32) -> (i32, i32) {
    %c0_i32 = arith.constant 0 : i32
    %c0_i32_0 = arith.constant 0 : i32
    %c0_i32_1 = arith.constant 0 : i32
    return %c0_i32, %c0_i32_0 : i32, i32
  }
  func.func @transform_5(%arg0: i32) -> (i32, i32) {
    %c0_i32 = arith.constant 0 : i32
    %c0_i32_0 = arith.constant 0 : i32
    %c0_i32_1 = arith.constant 0 : i32
    return %c0_i32, %c0_i32_0 : i32, i32
  }
  func.func @transform_6(%arg0: i32) -> (i32, i32) {
    %c0_i32 = arith.constant 0 : i32
    %c0_i32_0 = arith.constant 0 : i32
    %c0_i32_1 = arith.constant 0 : i32
    return %c0_i32, %c0_i32_0 : i32, i32
  }
  func.func @transform_7(%arg0: i32) -> (i32, i32) {
    %c0_i32 = arith.constant 0 : i32
    %c0_i32_0 = arith.constant 0 : i32
    %c0_i32_1 = arith.constant 0 : i32
    return %c0_i32, %c0_i32_0 : i32, i32
  }
  func.func @transform_8(%arg0: i32) -> (i32, i32) {
    %c0_i32 = arith.constant 0 : i32
    %c0_i32_0 = arith.constant 0 : i32
    %c0_i32_1 = arith.constant 0 : i32
    return %c0_i32, %c0_i32_0 : i32, i32
  }
  func.func @transform_9(%arg0: i32) -> (i32, i32, i32) {
    %c0_i32 = arith.constant 0 : i32
    %c0_i32_0 = arith.constant 0 : i32
    %c0_i32_1 = arith.constant 0 : i32
    return %arg0, %c0_i32, %c0_i32_0 : i32, i32, i32
  }
}

</mosaic_0001>

<bundles_post_ra>
// kernel: tpu_custom_call.1
= control target key start
LH: loop header
LB: loop body
LE: loop exit
PB: predicated region body
PF: predicated region fallthrough
CT: control target
= control target key end

     0   :  { %s1527_s0 = inlined_call_operand.vmem [shape: f32[16,32], index: 0, kind: input, shape index: {}]   ;;  %s1528_s1 = inlined_call_operand.vmem [shape: f32[2,1,8], index: 1, kind: input, shape index: {}]   ;;  %s1529_s2 = inlined_call_operand.vmem [shape: f32[50,32], index: 2, kind: input, shape index: {}]   ;;  %s1530_s3 = inlined_call_operand.vmem [shape: f32[50,1], index: 3, kind: input, shape index: {}]   ;;  %s1531_s4 = inlined_call_operand.vmem [shape: f32[50,1], index: 4, kind: input, shape index: {}]   ;;  %s1532_s5 = inlined_call_operand.vmem [shape: f32[30,50], index: 5, kind: input, shape index: {}]   ;;  %s1533_s6 = inlined_call_operand.vmem [shape: f32[30,1], index: 6, kind: input, shape index: {}]   ;;  %s1534_s7 = inlined_call_operand.vmem [shape: f32[1,30], index: 7, kind: input, shape index: {}]   ;;  %s1535_s8 = inlined_call_operand.<no memory space> [shape: f32[1,1], index: 8, kind: input, shape index: {}]   ;;  %s1536_s9 = inlined_call_operand.hbm [shape: f32[2,1,8], index: 9, kind: output, shape index: {}]  }
   0x1   :  { %v14_v0 = vstv %s1535_s8 }
   0x2   :  { %15 = vst [vmem:[#allocation2] sm:$0x1] %v14_v0 }
   0x3   :  { %16 = vsyncpa [#allocation4], 0 }
   0x4   :  { %18 = vsyncpa [#allocation4 + $0x1], 0  ;;  %s1301_s11 = smov 0   ;;  %s1303_s12 = smov 0  }
   0x5   :  { %s1305_s13 = smov 0   ;;  %s1307_s14 = smov 0  }
   0x6 LB: > { %s1322_s8 = sadd.s32 4294967295, %s1240_s14   ;;  %s951_s15 = sadd.s32 4294967294, %s1240_s14   ;;  %s1240_s14 = sphi %s1307_s14, %s1542_s14   ;;  %s1236_s13 = sphi %s1305_s13, %s1541_s13   ;;  %s1232_s12 = sphi %s1303_s12, %s1540_s12   ;;  %s1228_s11 = sphi %s1301_s11, %s1539_s11  }
   0x7   : > { %s1326_s16 = sadd.s32 1, %s1240_s14   ;;  %s230_s17 = sadd.s32 1, %s1236_s13 }
   0x8   : > { %s227_s18 = ssub.s32 %s1240_s14, %s1326_s16  ;;  %p240_p0 = scmp.ne.s32.totalorder %s1236_s13, %s1232_s12 }
   0x9   : > { %p228_p1 = scmp.eq.s32.totalorder %s227_s18, 0  ;;  %p241_p2 = scmp.eq.s32.totalorder %s1322_s8, 1 }
   0xa   : > { %p246_p3 = scmp.ne.s32.totalorder %s1232_s12, %s1228_s11  ;;  %p247_p4 = scmp.eq.s32.totalorder %s951_s15, 1 }
   0xb   : > { %s1337_s19 = scalar_select %p228_p1, %s1236_s13, %s230_s17  }
   0xc   : > { %p1339_p5 = por %p241_p2, %p240_p0  ;;  %p1343_p6 = por %p247_p4, %p246_p3 }
   0xd   : > { %p954_p7 = scmp.ge.s32.totalorder %s1240_s14, 1  ;;  %p299_p8 = scmp.lt.s32.totalorder %s1240_s14, 3 }
   0xf   : > { %p300_p9 = pnand %p954_p7, %p299_p8 }
  0x10   : > { %p336_p10 = scmp.lt.s32.totalorder (!%p300_p9), %s1322_s8, 1  ;;  %v1242_v1 = vmov (!%p300_p9), 0.0   ;;  %vm1243_vm0 = vmmov (!%p300_p9), 0   ;;  %v1244_v2 = vmov (!%p300_p9), 0   ;;  %v352_v3 = vld [vmem:[%s1530_s3] sm:$0xff] (!%p300_p9)  ;;  %v354_v4 = vld [vmem:[%s1530_s3 + $0x10] sm:$0xff] (!%p300_p9) }
  0x11   : > { %303 = sbr.rel (%p300_p9) target bundleno = 806 (0x326), region = 56  ;;  %1011 = vmatprep.subr.mxu0 (!%p300_p9), %v1242_v1  ;;  %1013 = vmatprep.mubr.msk.f32.mxu0 (!%p300_p9), %vm1243_vm0, %v1242_v1  ;;  %vm407_vm1 = vcmask (!%p300_p9), 261120   ;;  %v353_v5 = vld [vmem:[%s1530_s3 + $0x8] sm:$0xff] (!%p300_p9)  ;;  %v355_v6 = vld [vmem:[%s1530_s3 + $0x18] sm:$0xff] (!%p300_p9)  ;;  %v345_v8 = vld [vmem:[%s1529_s2] sm:$0xff] (!%p300_p9)  ;;  %vm651_vm2 = vcmask (!%p300_p9), 408576  }
  0x12   : > { %1128 = vset.pattern.permute.xlu0 (!%p300_p9), %v1244_v2  ;;  %1129 = vset.pattern.permute.xlu1 (!%p300_p9), %v1244_v2  ;;  %v532_v9 = vld [vmem:[%s1531_s4] sm:$0xff] (!%p300_p9)  ;;  %v533_v10 = vld [vmem:[%s1531_s4 + $0x8] sm:$0xff] (!%p300_p9)  ;;  %v347_v14 = vld [vmem:[%s1529_s2 + $0x10] sm:$0xff] (!%p300_p9)  ;;  %vm664_vm3 = vcmask (!%p300_p9), 1041408   ;;  %vm792_vm4 = vcmask (!%p300_p9), 1045504   ;;  %vm1246_vm5 = vmmov (!%p300_p9), 1  }
  0x13   : > { %361 = vperm.xlu0 (!%p300_p9), %1128, %v352_v3   ;;  %371 = vperm.xlu1 (!%p300_p9), %1129, %v354_v4   ;;  %v346_v11 = vld [vmem:[%s1529_s2 + $0x8] sm:$0xff] (!%p300_p9)  ;;  %v356_v12 = vld [vmem:[%s1530_s3 + $0x20] sm:$0xff] (!%p300_p9)  ;;  %v534_v15 = vld [vmem:[%s1531_s4 + $0x10] sm:$0xff] (!%p300_p9)  ;;  %vm788_vm7 = vcmask (!%p300_p9), 244736   ;;  %s984_s30 = sshll.u32 (!%p300_p9), %s1322_s8, 4  ;;  %vm872_vm8 = vcmask (!%p300_p9), 57344  }
  0x14   : > { %v357_v13 = vld [vmem:[%s1530_s3 + $0x28] sm:$0xff] (!%p300_p9)  ;;  %v535_v16 = vld [vmem:[%s1531_s4 + $0x18] sm:$0xff] (!%p300_p9)  ;;  %v536_v18 = vld [vmem:[%s1531_s4 + $0x20] sm:$0xff] (!%p300_p9)  ;;  %s1485_s18 = scalar_lea.hbm (!%p300_p9), %s1536_s9, %s984_s30 }
  0x15   : > { %v348_v17 = vld [vmem:[%s1529_s2 + $0x18] sm:$0xff] (!%p300_p9)  ;;  %v537_v19 = vld [vmem:[%s1531_s4 + $0x28] sm:$0xff] (!%p300_p9)  ;;  %v349_v20 = vld [vmem:[%s1529_s2 + $0x20] sm:$0xff] (!%p300_p9) }
  0x16   : > { %v358_v21 = vld [vmem:[%s1530_s3 + $0x30] sm:$0x3] (!%p300_p9)  ;;  %v350_v23 = vld [vmem:[%s1529_s2 + $0x28] sm:$0xff] (!%p300_p9)  ;;  %v627_v24 = vld [vmem:[%s1533_s6] sm:$0xff] (!%p300_p9) }
  0x17   : > { %366 = vperm.xlu0 (!%p300_p9), %1128, %v353_v5   ;;  %376 = vperm.xlu1 (!%p300_p9), %1129, %v355_v6   ;;  %v538_v22 = vld [vmem:[%s1531_s4 + $0x30] sm:$0x3] (!%p300_p9)  ;;  %v628_v25 = vld [vmem:[%s1533_s6 + $0x8] sm:$0xff] (!%p300_p9)  ;;  %v630_v28 = vld [vmem:[%s1533_s6 + $0x18] sm:$0x3f] (!%p300_p9) }
  0x18   : > { %s1354_s22 = scalar_select %p336_p10, %s1322_s8, 1  ;;  %v351_v26 = vld [vmem:[%s1529_s2 + $0x30] sm:$0x3]  ;;  %v778_v29 = vld [vmem:[#allocation2] sm:$0x1]  ;;  %vm1082_vm6 = vmpackc.low %vm792_vm4, %vm1246_vm5 }
  0x19   : > { %v629_v27 = vld [vmem:[%s1533_s6 + $0x10] sm:$0xff]  ;;  %v623_v30 = vld [vmem:[%s1532_s5] sm:$0xff]  ;;  %s1247_s8 = smov [#allocation3]  }
  0x1a   : > { %s955_s27 = sshll.u32 %s1354_s22, 3  ;;  %1048 = vmatprep.mubr.msk.f32.mxu1 %vm651_vm2, %v623_v30  ;;  %s342_s17 = scalar_lea.vmem %s1528_s1, %s1354_s22 }
  0x1b   : > { %s339_s15 = scalar_lea.vmem %s1527_s0, %s955_s27  ;;  %541 = vperm.xlu0 %1128, %v532_v9   ;;  %546 = vperm.xlu1 %1129, %v533_v10   ;;  %v956_v34 = vld [vmem:[%s342_s17] ss:$0 sm:$0xff]  ;;  %s334_s27 = sand.u32 1, %s1232_s12  }
  0x1c   : > { %v343_v7 = vld [vmem:[%s339_s15] sm:$0xff]  ;;  %s335_s10 = scalar_lea.vmem [#allocation3], %s334_s27  ;;  %s875_s23 = scalar_lea.sflag [#allocation4], %s334_s27 }
  0x1d   : > { %1012 = vmatpush3.xpose.msk.msra.mxu0 %vm407_vm1, %v343_v7  ;;  %s887_s15 = sshll.u32 %s335_s10, 4  ;;  %s1182_s25 = sshll.u32 %s1247_s8, 4  ;;  %s1487_s15 = int_to_ptr.vmem [resolvable:$true] %s887_s15  ;;  %s1183_s25 = int_to_ptr.vmem [resolvable:$false] %s1182_s25 }
  0x1e   : > { %s1178_s24 = scalar_lea.vmem %s1487_s15, 16  ;;  %s1184_s26 = scalar_lea.vmem %s1183_s25, 32 }
  0x1f   : > { %381 = vperm.xlu0 %1128, %v356_v12   ;;  %386 = vperm.xlu1 %1129, %v357_v13   ;;  %p1179_p11 = scmp.ne.s32.totalorder %s1487_s15, %s1178_s24  ;;  %p1185_p0 = scmp.lt.s32.totalorder %s1487_s15, %s1183_s25 }
  0x20   : > { %1014 = vmatmul.mubr.msk.f32.vlgmr.msra.gmra.mrb[0].mxu0 %vm407_vm1, %v345_v8  ;;  %p1186_p1 = scmp.lt.s32.totalorder %s1184_s26, %s1178_s24 }
  0x21   : > { %1016 = vmatprep.mubr.msk.f32.mxu0 %vm1243_vm0, %v1242_v1  ;;  %p1180_p12 = pnand %p1179_p11, %p1339_p5 }
  0x22   : > { %p1187_p2 = por %p1186_p1, %p1185_p0 }
  0x23   : > { %551 = vperm.xlu0 %1128, %v534_v15   ;;  %556 = vperm.xlu1 %1129, %v535_v16   ;;  %p1181_p13 = pneg %p1180_p12 }
  0x24   : > { %1017 = vmatmul.mubr.msk.f32.gmra.mrb[2].mxu0 %vm407_vm1, %v346_v11 }
  0x25   : > { %1019 = vmatprep.mubr.msk.f32.mxu0 %vm1243_vm0, %v1242_v1  ;;  %p1188_p3 = pnand %p1187_p2, %p1181_p13 }
  0x27   : > { %561 = vperm.xlu0 %1128, %v536_v18   ;;  %566 = vperm.xlu1 %1129, %v537_v19  }
  0x28   : > { %1020 = vmatmul.mubr.msk.f32.gmra.mrb[4].mxu0 %vm407_vm1, %v347_v14 }
  0x29   : > { %1022 = vmatprep.mubr.msk.f32.mxu0 %vm1243_vm0, %v1242_v1 }
  0x2b   : > { %391 = vperm.xlu0 %1128, %v358_v21   ;;  %571 = vperm.xlu1 %1129, %v538_v22  }
  0x2c   : > { %1023 = vmatmul.mubr.msk.f32.gmra.mrb[6].mxu0 %vm407_vm1, %v348_v17 }
  0x2d   : > { %1025 = vmatprep.mubr.msk.f32.mxu0 %vm1243_vm0, %v1242_v1 }
  0x2f   : > { %633 = vperm.xlu0 %1128, %v627_v24   ;;  %638 = vperm.xlu1 %1129, %v628_v25  }
  0x30   : > { %1026 = vmatmul.mubr.msk.f32.gmra.mrb[8].mxu0 %vm407_vm1, %v349_v20 }
  0x31   : > { %1028 = vmatprep.mubr.msk.f32.mxu0 %vm1243_vm0, %v1242_v1 }
  0x33   : > { %643 = vperm.xlu0 %1128, %v629_v27   ;;  %648 = vperm.xlu1 %1129, %v630_v28  }
  0x34   : > { %1029 = vmatmul.mubr.msk.f32.gmra.mrb[10].mxu0 %vm407_vm1, %v350_v23 }
  0x35   : > { %1031 = vmatprep.mubr.msk.f32.mxu0 %vm1243_vm0, %v1242_v1 }
  0x37   : > { %781 = vperm.xlu0 %1128, %v778_v29  }
  0x38   : > { %1032 = vmatmul.mubr.msk.f32.gmra.mrb[12].mxu0 %vm407_vm1, %v351_v26 }
  0x92   : > { %v362_v31 = vpop.permute.xlu0 %361  ;;  %v372_v32 = vpop.permute.xlu1 %371 }
  0x93   : > { %v400_v36 = vmul.f32 %v956_v34, %v362_v31  ;;  %v402_v49 = vmul.f32 %v956_v34, %v372_v32 }
  0x96   : > { %v367_v33 = vpop.permute.xlu0 %366  ;;  %v377_v35 = vpop.permute.xlu1 %376 }
  0x97   : > { %v401_v42 = vmul.f32 %v956_v34, %v367_v33  ;;  %v403_v57 = vmul.f32 %v956_v34, %v377_v35 }
  0x9a   : > { %v542_v37 = vpop.permute.xlu0 %541  ;;  %v547_v41 = vpop.permute.xlu1 %546 }
  0x9e   : > { %v382_v44 = vpop.permute.xlu0 %381  ;;  %v387_v51 = vpop.permute.xlu1 %386 }
  0x9f   : > { %v404_v0 = vmul.f32 %v956_v34, %v382_v44  ;;  %v405_v10 = vmul.f32 %v956_v34, %v387_v51  ;;  %v626_v51 = vld [vmem:[%s1532_s5 + $0x18] sm:$0x3f] }
  0xa2   : > { %v552_v56 = vpop.permute.xlu0 %551  ;;  %v557_v63 = vpop.permute.xlu1 %556 }
  0xa6   : > { %v562_v3 = vpop.permute.xlu0 %561  ;;  %v567_v12 = vpop.permute.xlu1 %566 }
  0xaa   : > { %v392_v18 = vpop.permute.xlu0 %391  ;;  %v572_v27 = vpop.permute.xlu1 %571 }
  0xab   : > { %v406_v20 = vmul.f32 %v956_v34, %v392_v18 }
  0xf3   : > { %v498_v38 = vpop.f32.mrb[0].mxu0 }
  0xf4   : > { %v499_v39 = vadd.f32 %v498_v38, %v400_v36  ;;  %v1015_v40 = vpop.f32.mrb[1].mxu0 }
  0xf6   : > { %v574_v43 = vadd.f32 %v542_v37, %v499_v39 }
  0xf7   : > { %v503_v45 = vpop.f32.mrb[2].mxu0 }
  0xf8   : > { %v965_v46 = vmul.f32 -1.442695, %v574_v43  ;;  %v504_v47 = vadd.f32 %v503_v45, %v401_v42  ;;  %v1018_v48 = vpop.f32.mrb[3].mxu0 }
  0xfa   : > { %1130 = vpow2.f32 %v965_v46  ;;  %v575_v50 = vadd.f32 %v547_v41, %v504_v47 }
  0xfb   : > { %v508_v52 = vpop.f32.mrb[4].mxu0 }
  0xfc   : > { %v966_v53 = vmul.f32 -1.442695, %v575_v50  ;;  %v509_v54 = vadd.f32 %v508_v52, %v402_v49  ;;  %v1021_v55 = vpop.f32.mrb[5].mxu0  ;;  %v624_v49 = vld [vmem:[%s1532_s5 + $0x8] sm:$0xff]  ;;  %v625_v50 = vld [vmem:[%s1532_s5 + $0x10] sm:$0xff]  ;;  %v1245_v52 = vmov 0.0|0.0  }
  0xfe   : > { %1132 = vpow2.f32 %v966_v53  ;;  %v576_v58 = vadd.f32 %v552_v56, %v509_v54  ;;  %v639_v53 = vpop.permute.xlu1 %638  ;;  %v634_v54 = vpop.permute.xlu0 %633 }
  0xff   : > { %v513_v59 = vpop.f32.mrb[6].mxu0 }
 0x100   : > { %v967_v60 = vmul.f32 -1.442695, %v576_v58  ;;  %v514_v61 = vadd.f32 %v513_v59, %v403_v57  ;;  %v1024_v62 = vpop.f32.mrb[7].mxu0 }
 0x102   : > { %1134 = vpow2.f32 %v967_v60  ;;  %v577_v2 = vadd.f32 %v557_v63, %v514_v61  ;;  %v649_v60 = vpop.permute.xlu1 %648  ;;  %v644_v63 = vpop.permute.xlu0 %643 }
 0x103   : > { %v518_v4 = vpop.f32.mrb[8].mxu0 }
 0x104   : > { %v1131_v5 = vpop.eup %1130  ;;  %v968_v6 = vmul.f32 -1.442695, %v577_v2  ;;  %v519_v7 = vadd.f32 %v518_v4, %v404_v0  ;;  %v1027_v8 = vpop.f32.mrb[9].mxu0 }
 0x105   : > { %v602_v9 = vadd.f32 1.0, %v1131_v5 }
 0x106   : > { %1136 = vpow2.f32 %v968_v6  ;;  %v578_v11 = vadd.f32 %v562_v3, %v519_v7 }
 0x107   : > { %v523_v13 = vpop.f32.mrb[10].mxu0  ;;  %1138 = vrcp.f32 %v602_v9 }
 0x108   : > { %v1133_v14 = vpop.eup %1132  ;;  %v969_v15 = vmul.f32 -1.442695, %v578_v11  ;;  %v524_v16 = vadd.f32 %v523_v13, %v405_v10  ;;  %v1030_v17 = vpop.f32.mrb[11].mxu0 }
 0x109   : > { %v603_v19 = vadd.f32 1.0, %v1133_v14 }
 0x10a   : > { %1140 = vpow2.f32 %v969_v15  ;;  %v579_v21 = vadd.f32 %v567_v12, %v524_v16 }
 0x10b   : > { %1142 = vrcp.f32 %v603_v19  ;;  %v528_v22 = vpop.f32.mrb[12].mxu0  ;;  %v777_v19 = vld [vmem:[%s1534_s7] sm:$0x1] }
 0x10c   : > { %v1135_v23 = vpop.eup %1134  ;;  %v970_v24 = vmul.f32 -1.442695, %v579_v21  ;;  %v529_v25 = vadd.f32 %v528_v22, %v406_v20  ;;  %v1033_v26 = vpop.f32.mrb[13].mxu0  ;;  %v784_v20 = vlaneseq }
 0x10d   : > { %v604_v28 = vadd.f32 1.0, %v1135_v23  ;;  %v782_v23 = vpop.permute.xlu0 %781 }
 0x10e   : > { %1144 = vpow2.f32 %v970_v24  ;;  %v580_v29 = vadd.f32 %v572_v27, %v529_v25  ;;  %v785_v21 = vshrl.u32 %v784_v20, 7 }
 0x10f   : > { %1146 = vrcp.f32 %v604_v28 }
 0x110   : > { %v1137_v30 = vpop.eup %1136  ;;  %v971_v31 = vmul.f32 -1.442695, %v580_v29  ;;  %v786_v22 = vsub.s32 0, %v785_v21 }
 0x111   : > { %v605_v32 = vadd.f32 1.0, %v1137_v30  ;;  %v1139_v33 = vpop.eup %1138 }
 0x112   : > { %1148 = vpow2.f32 %v971_v31  ;;  %v787_v24 = vrot.slane %v782_v23, %v786_v22 }
 0x113   : > { %1150 = vrcp.f32 %v605_v32 }
 0x114   : > { %v1141_v34 = vpop.eup %1140 }
 0x115   : > { %v1143_v35 = vpop.eup %1142  ;;  %v606_v36 = vadd.f32 1.0, %v1141_v34 }
 0x116   : > { %v1065_v37 = vpack.c.bf16 %v1143_v35, %v1139_v33 }
 0x117   : > { %1152 = vrcp.f32 %v606_v36 }
 0x118   : > { %v1145_v38 = vpop.eup %1144  ;;  %1066 = vmatprep.subr.bf16.mxu1 %v1065_v37 }
 0x119   : > { %v607_v39 = vadd.f32 1.0, %v1145_v38  ;;  %1068 = vmatpush3.bf16.msra.mxu1 %v1065_v37  ;;  %v1147_v40 = vpop.eup %1146 }
 0x11b   : > { %1154 = vrcp.f32 %v607_v39 }
 0x11c   : > { %v1149_v41 = vpop.eup %1148 }
 0x11d   : > { %v1151_v42 = vpop.eup %1150  ;;  %v608_v43 = vadd.f32 1.0, %v1149_v41 }
 0x11e   : > { %v1069_v44 = vpack.c.bf16 %v1151_v42, %v1147_v40 }
 0x11f   : > { %1156 = vrcp.f32 %v608_v43 }
 0x120   : > { %1070 = vmatprep.subr.bf16.mxu1 %v1069_v44 }
 0x121   : > { %1072 = vmatpush3.bf16.msra.mxu1 %v1069_v44  ;;  %v1153_v45 = vpop.eup %1152 }
 0x125   : > { %v1155_v46 = vpop.eup %1154 }
 0x126   : > { %v1073_v47 = vpack.c.bf16 %v1155_v46, %v1153_v45 }
 0x128   : > { %1074 = vmatprep.subr.bf16.mxu1 %v1073_v47 }
 0x129   : > { %v1157_v48 = vpop.eup %1156  ;;  %1076 = vmatpush3.bf16.msra.mxu1 %v1073_v47 }
 0x12a   : > { %1046 = vmatprep.subr.msk.mxu1 %vm664_vm3, %v1157_v48 }
 0x12d   : > { %1047 = vmatpush3.msk.msra.mxu1 %vm664_vm3, %v1157_v48 }
 0x12e   : > { %1049 = vmatmul.mubr.msk.f32.vlgmr.msra.gmra.mrb[0].mxu1 %vm651_vm2, %v624_v49  ;;  %1077 = vmatprep.subr.bf16.mxu1 %v1245_v52 }
 0x12f   : > { %1051 = vmatprep.mubr.msk.f32.mxu1 %vm651_vm2, %v625_v50 }
 0x132   : > { %1052 = vmatmul.mubr.msk.f32.gmra.mrb[2].mxu1 %vm651_vm2, %v626_v51 }
 0x133   : > { %1062 = vmatprep.mubr.msk.f32.mxu1 %vm1243_vm0, %v1242_v1 }
 0x201   : > { %v1050_v55 = vpop.f32.mrb[0].mxu1 }
 0x202   : > { %v740_v56 = vadd.f32 %v1050_v55, %v639_v53  ;;  %v734_v57 = vpop.f32.mrb[1].mxu1 }
 0x203   : > { %v735_v58 = vadd.f32 %v734_v57, %v634_v54 }
 0x204   : > { %v978_v59 = vmul.f32 -1.442695, %v740_v56 }
 0x205   : > { %v977_v61 = vmul.f32 -1.442695, %v735_v58  ;;  %v1053_v62 = vpop.f32.mrb[2].mxu1 }
 0x206   : > { %1158 = vpow2.f32 %v978_v59  ;;  %v750_v0 = vadd.f32 %v1053_v62, %v649_v60  ;;  %v744_v2 = vpop.f32.mrb[3].mxu1 }
 0x207   : > { %1160 = vpow2.f32 %v977_v61  ;;  %v745_v3 = vadd.f32 %v744_v2, %v644_v63 }
 0x208   : > { %v980_v4 = vmul.f32 -1.442695, %v750_v0 }
 0x209   : > { %v979_v1 = vmul.f32 -1.442695, %v745_v3 }
 0x20a   : > { %1162 = vpow2.f32 %v980_v4 }
 0x20b   : > { %1164 = vpow2.f32 %v979_v1 }
 0x210   : > { %v1159_v5 = vpop.eup %1158 }
 0x211   : > { %v1161_v6 = vpop.eup %1160  ;;  %v766_v7 = vadd.f32 1.0, %v1159_v5 }
 0x212   : > { %v765_v8 = vadd.f32 1.0, %v1161_v6 }
 0x213   : > { %1166 = vrcp.f32 %v766_v7 }
 0x214   : > { %v1163_v9 = vpop.eup %1162  ;;  %1168 = vrcp.f32 %v765_v8 }
 0x215   : > { %v1165_v10 = vpop.eup %1164  ;;  %v768_v11 = vadd.f32 1.0, %v1163_v9 }
 0x216   : > { %v767_v12 = vadd.f32 1.0, %v1165_v10 }
 0x217   : > { %1170 = vrcp.f32 %v768_v11 }
 0x218   : > { %1172 = vrcp.f32 %v767_v12 }
 0x21d   : > { %v1167_v13 = vpop.eup %1166 }
 0x21e   : > { %v1169_v14 = vpop.eup %1168 }
 0x21f   : > { %v1078_v15 = vpack.c.bf16 %v1167_v13, %v1169_v14 }
 0x221   : > { %v1171_v16 = vpop.eup %1170  ;;  %1079 = vmatpush3.bf16.msra.mxu1 %v1078_v15 }
 0x222   : > { %v1173_v17 = vpop.eup %1172  ;;  %1080 = vmatprep.subr.bf16.mxu1 %v1245_v52 }
 0x223   : > { %v1081_v18 = vpack.c.bf16 %v1171_v16, %v1173_v17 }
 0x225   : > { %1083 = vmatpush3.bf16.msk.msra.mxu1 %vm1082_vm6, %v1081_v18 }
 0x228   : > { %1063 = vmatmul.mubr.msk.f32.vlgmr.msra.gmra.mrb[4].mxu1 %vm788_vm7, %v777_v19 }
 0x2fb   : > { %v862_v25 = vpop.f32.mrb[4].mxu1 }
 0x2fc   : > { %v863_v26 = vadd.f32 %v862_v25, %v787_v24  ;;  %v1064_v27 = vpop.f32.mrb[5].mxu1 }
 0x2fe   : > { %v983_v28 = vmul.f32 -1.442695, %v863_v26 }
 0x300   : > { %1174 = vpow2.f32 %v983_v28 }
 0x30a   : > { %v1175_v29 = vpop.eup %1174 }
 0x30b   : > { %v869_v30 = vadd.f32 1.0, %v1175_v29 }
 0x30d   : > { %1176 = vrcp.f32 %v869_v30 }
 0x317   : > { %v1177_v31 = vpop.eup %1176 }
 0x318   : > { %873 = vst.msk [vmem:[%s335_s10] sm:$0x1] %vm872_vm8, %v1177_v31 }
 0x319   : > { %1191 = shalt.err (!%p1188_p3)
}
 0x31a   : > { %s1192_s28 = scalar_lea.hbm %s1485_s18, 16  ;;  %s1196_s30 = scalar_lea.hbm %s1536_s9, 32 }
 0x31b   : > { %p1193_p4 = scmp.ne.s32.totalorder %s1485_s18, %s1192_s28  ;;  %p1197_p9 = scmp.lt.u32.totalorder %s1485_s18, %s1536_s9 }
 0x31c   : > { %p1198_p10 = scmp.lt.u32.totalorder %s1196_s30, %s1192_s28  ;;  %p1200_p12 = scmp.lt.u32.totalorder %s1192_s28, %s1485_s18 }
 0x31d   : > { %p1194_p7 = pnand %p1193_p4, %p1339_p5 }
 0x31e   : > { %p1199_p11 = por %p1198_p10, %p1197_p9 }
 0x31f   : > { %p1195_p8 = pneg %p1194_p7 }
 0x320   : > { %p1201_p13 = por %p1200_p12, %p1199_p11 }
 0x322   : > { %p1202_p0 = pnand %p1201_p13, %p1195_p8 }
 0x324   : > { %1205 = shalt.err (!%p1202_p0)
}
 0x325   : > { %1084 = dma.vmem_to_hbm [thread:$0]  (%p1339_p5), %s1487_s15, 16, %s1485_s18, %s875_s23  }
 0x326 PF: > { %p1090_p1 = scmp.ge.s32.totalorder %s1240_s14, 2  ;;  %s899_s22 = sand.u32 1, %s1228_s11  }
 0x327   : > { %s900_s24 = scalar_lea.sflag [#allocation4], %s899_s22 }
 0x328   : > { %p1087_p2 = pnand %p1090_p1, %p1343_p6 }
 0x32a   : > { %1223 = dma.done.wait (!%p1087_p2), %s900_s24, 16  }
 0x32b   : > { %1225 = vsyncadd (!%p1087_p2), %s900_s24, 4294967280  ;;  %p21_p3 = scmp.ge.s32.totalorder %s1326_s16, 4   ;;  %s1539_s11 = smov %s1232_s12 }
 0x32c   : > { %s1540_s12 = smov %s1236_s13  ;;  %s1541_s13 = smov %s1337_s19 }
 0x32d   : > { %s1542_s14 = smov %s1326_s16  ;;  %23 = sbr.rel (!%p21_p3) target bundleno = 6 (0x6), region = 94 }
 0x334   :  { %904 = vsyncpa [#allocation4], 1 }
 0x335   :  { %906 = vsyncpa [#allocation4 + $0x1], 1 }

</bundles_post_ra>
